<compile_context>
chip_gen: v7x
topology: tpu7x:2x2x1
jax: 0.10.0
libtpu: 0.0.40
codegen_flags: <defaults>
</compile_context>

<pallas_src>
import jax
import jax.numpy as jnp
from jax.experimental import pallas as pl
from jax.experimental.pallas import tpu as pltpu

_M = 100.0
_K = 1.0

_LANES = 128
_SUBLANES = 8
_TILE_ROWS = 4096  # 4096 x 128 f32 = 2 MiB per block (1 MiB for bf16)


def _my_activation_kernel(x_ref, o_ref):
    # Upcast to f32 inside the kernel (free under DMA; required on v5e which
    # has no bf16 VPU/EUP). exp goes to the EUP, the rest is VPU elementwise.
    x = x_ref[...].astype(jnp.float32)
    e = jnp.exp(-_K * x)
    y = 1.0 + (_M - 1.0) * pl.reciprocal(1.0 + e, approx=False)
    o_ref[...] = y.astype(o_ref.dtype)


def my_activation(x):
    """Elementwise 1 + (M-1)/(1+exp(-k*x)) via a Pallas TPU kernel."""
    orig_shape = x.shape
    orig_dtype = x.dtype

    xf = x.reshape(-1)
    n = xf.shape[0]

    # Pad only the flat tail up to a multiple of 8*128 = 1024 elements so the
    # slab reshapes to (rows, 128) with rows % 8 == 0. Most shapes need no
    # pad at all; worst case is a <= 1023-element zero pad (near-free).
    vreg_elems = _SUBLANES * _LANES
    rem = n % vreg_elems
    pad = 0 if rem == 0 else vreg_elems - rem
    if pad:
        xf = jnp.pad(xf, (0, pad))

    rows = (n + pad) // _LANES
    x2d = xf.reshape(rows, _LANES)

    # Block rows: full array if it is small, otherwise 4096 (multiple of 32,
    # so it satisfies packed-sublane divisibility for f32/bf16/int8 alike).
    # Partial last block is handled by Pallas; grid = cdiv, no array padding.
    tile_rows = rows if rows <= _TILE_ROWS else _TILE_ROWS
    grid = (pl.cdiv(rows, tile_rows),)

    out2d = pl.pallas_call(
        _my_activation_kernel,
        out_shape=jax.ShapeDtypeStruct((rows, _LANES), orig_dtype),
        grid_spec=pltpu.PrefetchScalarGridSpec(
            num_scalar_prefetch=0,
            grid=grid,
            in_specs=[pl.BlockSpec((tile_rows, _LANES), lambda i: (i, 0))],
            out_specs=pl.BlockSpec((tile_rows, _LANES), lambda i: (i, 0)),
        ),
        compiler_params=pltpu.CompilerParams(
            dimension_semantics=("parallel",),
        ),
    )(x2d)

    out = out2d.reshape(-1)
    if pad:
        out = out[:n]
    return out.reshape(orig_shape)


def _reference(x):
    # Pure-JAX reference mirroring the PyTorch forward (compute in f32,
    # return in the input dtype).
    y = 1.0 + (_M - 1.0) / (1.0 + jnp.exp(-_K * x.astype(jnp.float32)))
    return y.astype(x.dtype)


if __name__ == "__main__":
    key = jax.random.PRNGKey(0)

    # Primary test: NCHW f32 input consistent with the module's intended use.
    x = jax.random.normal(key, (2, 4, 16, 16), dtype=jnp.float32)
    y = my_activation(x)
    jax.block_until_ready(y)
    y_ref = _reference(x)
    assert y.shape == x.shape and y.dtype == x.dtype
    assert jnp.allclose(y, y_ref, atol=1e-5, rtol=1e-5)

    # Ragged shape exercising the partial-tail pad path.
    k2 = jax.random.PRNGKey(1)
    x_odd = jax.random.normal(k2, (3, 5, 7), dtype=jnp.float32)
    y_odd = my_activation(x_odd)
    jax.block_until_ready(y_odd)
    assert y_odd.shape == x_odd.shape
    assert jnp.allclose(y_odd, _reference(x_odd), atol=1e-5, rtol=1e-5)

    # bf16 path: native-dtype streaming, dtype preserved.
    x_bf = jax.random.normal(jax.random.PRNGKey(2), (2, 4, 16, 16),
                             dtype=jnp.bfloat16)
    y_bf = my_activation(x_bf)
    jax.block_until_ready(y_bf)
    assert y_bf.dtype == jnp.bfloat16 and y_bf.shape == x_bf.shape
    assert jnp.allclose(y_bf.astype(jnp.float32),
                        _reference(x_bf).astype(jnp.float32),
                        atol=1.0, rtol=1e-2)

    print("KERNEL_OK")
</pallas_src>

<mosaic_0001>
module attributes {stable_mosaic.version = 11 : i64} {
  func.func @_my_activation_kernel(%arg0: i32, %arg1: memref<16x128xf32, #tpu.memory_space<vmem>>, %arg2: memref<16x128xf32, #tpu.memory_space<vmem>>) attributes {dimension_semantics = [#tpu.dimension_semantics<parallel>], iteration_bounds = array<i64: 1>, scalar_prefetch = 0 : i64, scratch_operands = 0 : i64, tpu.core_type = #tpu.core_type<tc>, window_params = [{transform_indices = @transform_0, window_bounds = array<i64: 16, 128>}, {transform_indices = @transform_1, window_bounds = array<i64: 16, 128>}]} {
    %c0 = arith.constant 0 : index
    %c0_0 = arith.constant 0 : index
    %0 = vector.load %arg1[%c0, %c0_0] : memref<16x128xf32, #tpu.memory_space<vmem>>, vector<16x128xf32>
    %cst = arith.constant -1.000000e+00 : f32
    %1 = vector.broadcast %cst : f32 to vector<16x128xf32>
    %2 = arith.mulf %1, %0 : vector<16x128xf32>
    %3 = math.exp %2 : vector<16x128xf32>
    %cst_1 = arith.constant 1.000000e+00 : f32
    %4 = vector.broadcast %cst_1 : f32 to vector<16x128xf32>
    %5 = arith.addf %4, %3 : vector<16x128xf32>
    %6 = tpu.reciprocal %5 : vector<16x128xf32> -> vector<16x128xf32>
    %cst_2 = arith.constant 9.900000e+01 : f32
    %7 = vector.broadcast %cst_2 : f32 to vector<16x128xf32>
    %8 = arith.mulf %7, %6 : vector<16x128xf32>
    %cst_3 = arith.constant 1.000000e+00 : f32
    %9 = vector.broadcast %cst_3 : f32 to vector<16x128xf32>
    %10 = arith.addf %9, %8 : vector<16x128xf32>
    %c0_4 = arith.constant 0 : index
    %c0_5 = arith.constant 0 : index
    %11 = vector.load %arg2[%c0_4, %c0_5] : memref<16x128xf32, #tpu.memory_space<vmem>>, vector<16x128xf32>
    tpu.vector_store %arg2[%c0_4, %c0_5], %10 {strides = array<i32>} : memref<16x128xf32, #tpu.memory_space<vmem>>, vector<16x128xf32>,
    return
  }
  func.func @transform_0(%arg0: i32) -> (i32, i32) {
    %c0_i32 = arith.constant 0 : i32
    %c0_i32_0 = arith.constant 0 : i32
    return %arg0, %c0_i32 : i32, i32
  }
  func.func @transform_1(%arg0: i32) -> (i32, i32) {
    %c0_i32 = arith.constant 0 : i32
    %c0_i32_0 = arith.constant 0 : i32
    return %arg0, %c0_i32 : i32, i32
  }
}

</mosaic_0001>

<bundles_post_ra>
// kernel: tpu_custom_call.1
= control target key start
LH: loop header
LB: loop body
LE: loop exit
PB: predicated region body
PF: predicated region fallthrough
CT: control target
= control target key end

     0   :  { %6 = vsyncpa [#allocation3], 0  ;;  %s162_s0 = inlined_call_operand.hbm [shape: f32[16,128], index: 0, kind: input, shape index: {}]   ;;  %s163_s1 = inlined_call_operand.hbm [shape: f32[16,128], index: 1, kind: output, shape index: {}]  }
   0x1   :  { %7 = vsyncpa [#allocation4], 0  ;;  %s118_s6 = smov [#allocation2]   ;;  %s70_s10 = scalar_lea.hbm %s162_s0, 256 }
   0x2   :  { %s13_s7 = sshll.u32 %s118_s6, 4  ;;  %p71_p0 = scmp.ne.s32.totalorder %s162_s0, %s70_s10  ;;  %s14_s7 = int_to_ptr.vmem [resolvable:$true] %s13_s7 }
   0x3   :  { %p74_p1 = scmp.lt.u32.totalorder %s70_s10, %s162_s0 }
   0x5   :  { %p76_p2 = pnand %p74_p1, %p71_p0 }
   0x7   :  { %79 = shalt.err (!%p76_p2)
}
   0x8   :  { %s80_s15 = scalar_lea.vmem %s14_s7, 256  ;;  %p85_p4 = scmp.lt.s32.totalorder %s14_s7, %s14_s7 }
   0x9   :  { %p81_p3 = scmp.ne.s32.totalorder %s14_s7, %s80_s15  ;;  %p86_p5 = scmp.lt.s32.totalorder %s80_s15, %s80_s15 }
   0xb   :  { %p87_p6 = por %p86_p5, %p85_p4 }
   0xd   :  { %p88_p7 = pnand %p87_p6, %p81_p3 }
   0xf   :  { %91 = shalt.err (!%p88_p7)
}
  0x10   :  { %s119_s16 = smov 128   ;;  %s120_s17 = smov 8  }
  0x11   :  { %19 = dma.hbm_to_vmem [thread:$0]  %s162_s0, 256, %s14_s7, [#allocation3], %s119_s16, %s119_s16, %s120_s17  }
  0x12   :  { %114 = dma.done.wait [#allocation3], 256  }
  0x13   :  { %115 = vsyncadd [#allocation3], 4294967040  ;;  %v23_v0 = vld [vmem:[#allocation2] sm:$0xff]  ;;  %v24_v1 = vld [vmem:[#allocation2 + $0x8] sm:$0xff]  ;;  %s121_s0 = smov [#allocation5]  }
  0x14   :  { %v25_v2 = vmul.f32 -1.0, %v23_v0  ;;  %v26_v3 = vmul.f32 -1.0, %v24_v1  ;;  %s46_s20 = sshll.u32 %s121_s0, 4  ;;  %s47_s20 = int_to_ptr.vmem [resolvable:$true] %s46_s20 }
  0x15   :  { %s92_s21 = scalar_lea.vmem %s47_s20, 256  ;;  %p97_p9 = scmp.lt.s32.totalorder %s47_s20, %s47_s20 }
  0x16   :  { %v27_v4 = vmul.f32 1.442695, %v25_v2  ;;  %v29_v5 = vmul.f32 1.442695, %v26_v3  ;;  %p93_p8 = scmp.ne.s32.totalorder %s47_s20, %s92_s21  ;;  %p98_p10 = scmp.lt.s32.totalorder %s92_s21, %s92_s21 }
  0x18   :  { %62 = vpow2.f32 %v27_v4  ;;  %p99_p11 = por %p98_p10, %p97_p9 }
  0x19   :  { %64 = vpow2.f32 %v29_v5 }
  0x1a   :  { %p100_p12 = pnand %p99_p11, %p93_p8 }
  0x22   :  { %v63_v6 = vpop.eup %62 }
  0x23   :  { %v65_v7 = vpop.eup %64  ;;  %v31_v8 = vadd.f32 1.0, %v63_v6 }
  0x24   :  { %v32_v9 = vadd.f32 1.0, %v65_v7 }
  0x25   :  { %66 = vrcp.f32 %v31_v8 }
  0x26   :  { %68 = vrcp.f32 %v32_v9 }
  0x2f   :  { %v67_v10 = vpop.eup %66 }
  0x30   :  { %v69_v11 = vpop.eup %68  ;;  %v35_v12 = vmul.f32 99.0, %v67_v10 }
  0x31   :  { %v36_v13 = vmul.f32 99.0, %v69_v11 }
  0x32   :  { %v37_v14 = vadd.f32 1.0, %v35_v12 }
  0x33   :  { %v38_v15 = vadd.f32 1.0, %v36_v13 }
  0x34   :  { %39 = vst [vmem:[#allocation5] sm:$0xff] %v37_v14 }
  0x35   :  { %40 = vst [vmem:[#allocation5 + $0x8] sm:$0xff] %v38_v15 }
  0x36   :  { %103 = shalt.err (!%p100_p12)
}
  0x37   :  { %s104_s24 = scalar_lea.hbm %s163_s1, 256 }
  0x38   :  { %p105_p13 = scmp.ne.s32.totalorder %s163_s1, %s104_s24  ;;  %p108_p0 = scmp.lt.u32.totalorder %s104_s24, %s163_s1 }
  0x3a   :  { %p110_p1 = pnand %p108_p0, %p105_p13 }
  0x3c   :  { %113 = shalt.err (!%p110_p1)
}
  0x3d   :  { %52 = dma.vmem_to_hbm [thread:$0]  %s47_s20, 256, %s163_s1, [#allocation4], %s119_s16, %s119_s16, %s120_s17  }
  0x3e   :  { %116 = dma.done.wait [#allocation4], 256  }
  0x3f   :  { %117 = vsyncadd [#allocation4], 4294967040 }
  0x40   :  { %56 = vsyncpa [#allocation3], 1 }
  0x41   :  { %57 = vsyncpa [#allocation4], 1 }

</bundles_post_ra>
